<compile_context>
chip_gen: v7x
topology: tpu7x:2x2x1
jax: 0.10.0
libtpu: 0.0.40
codegen_flags: <defaults>
</compile_context>

<pallas_src>
import jax
import jax.numpy as jnp
from jax.experimental import pallas as pl
from jax.experimental.pallas import tpu as pltpu

# Problem sizes (concrete small student).
B, CIN, H, W = 2, 4, 16, 16
COUT = 8
NUM_CLASSES = 10
K = 3  # conv kernel size

HW = H * W                  # 256 spatial positions per image
NPOS = B * HW               # 512 positions total (sublane dim, multiple of 8)
PATCH = K * K * CIN         # 36 im2col features per position
ONES_COL = PATCH            # index of the all-ones column (folds the conv bias)
PATCH_PAD = 40              # 36 + 1 ones col + 3 zero cols -> multiple of 8
CONST_CH = COUT             # extra "always 1.0" channel (folds the fc bias)
CAUG = 16                   # 8 conv channels + 1 constant channel + 7 zero pad
B_PAD = 8                   # batch padded to a full sublane group
NC_PAD = 128                # classes padded to a full 128-lane group


def _student_kernel(patches_ref, cw_ref, pool_ref, fc_ref, out_ref):
    # patches_ref : (NPOS, PATCH_PAD)  row-major im2col; column ONES_COL = 1.0
    # cw_ref      : (PATCH_PAD, CAUG)  conv weights; row ONES_COL = conv bias,
    #                                  (ONES_COL, CONST_CH) = 1.0 -> constant-1 channel
    # pool_ref    : (B_PAD, NPOS)      global-average-pool matrix (1/HW blocks, zero rows >= B)
    # fc_ref      : (CAUG, NC_PAD)     fc weights; row CONST_CH = fc bias; lanes padded to 128
    # out_ref     : (B_PAD, NC_PAD)    padded logits (valid region [:B, :NUM_CLASSES])

    # Conv as one MXU matmul; conv bias rides the ones column.  Natural (M,K)x(K,N).
    h = jnp.maximum(
        jnp.dot(patches_ref[...], cw_ref[...], preferred_element_type=jnp.float32),
        0.0,
    )                                                                    # (512, 16)

    # Global average pooling as an MXU matmul (MXU has slack; no reshape/XLU reduce).
    feat = jnp.dot(pool_ref[...], h, preferred_element_type=jnp.float32)  # (8, 16)

    # Final FC; constant-1 channel (row CONST_CH of fc_ref) carries the fc bias.
    logits = jnp.dot(feat, fc_ref[...], preferred_element_type=jnp.float32)  # (8, 128)
    out_ref[...] = logits.astype(out_ref.dtype)


def pack_params(params):
    """One-time packing of student parameters into MXU-ready operands (done once,
    outside the per-call jit)."""
    conv_w, conv_b, fc_w, fc_b = params

    # Conv weights as (PATCH, COUT) with patch index ordered (kh, kw, ci), augmented:
    # row ONES_COL = conv bias; (ONES_COL, CONST_CH) = 1.0 so that channel is exactly
    # 1.0 after ReLU (fc-bias carrier).  Zero-padded to (PATCH_PAD, CAUG).
    cw_kc = jnp.transpose(conv_w, (2, 3, 1, 0)).reshape(PATCH, COUT).astype(jnp.float32)
    cw_packed = jnp.zeros((PATCH_PAD, CAUG), jnp.float32)
    cw_packed = cw_packed.at[:PATCH, :COUT].set(cw_kc)
    cw_packed = cw_packed.at[ONES_COL, :COUT].set(conv_b.astype(jnp.float32))
    cw_packed = cw_packed.at[ONES_COL, CONST_CH].set(1.0)

    # FC weights padded to 128 lanes; row CONST_CH = fc bias.
    fc_aug = jnp.zeros((CAUG, NC_PAD), jnp.float32)
    fc_aug = fc_aug.at[:COUT, :NUM_CLASSES].set(fc_w.astype(jnp.float32))
    fc_aug = fc_aug.at[CONST_CH, :NUM_CLASSES].set(fc_b.astype(jnp.float32))

    # Average-pool matrix (B_PAD, NPOS).  Rows >= B are zero, so padded batch rows
    # stay exactly zero and the constant channel never leaks into real outputs.
    b_idx = jnp.arange(B_PAD, dtype=jnp.int32)[:, None]
    p_idx = jnp.arange(NPOS, dtype=jnp.int32)[None, :]
    pool_t = jnp.where(p_idx // HW == b_idx, 1.0 / HW, 0.0).astype(jnp.float32)  # (8, 512)

    return (cw_packed, fc_aug, pool_t)


def _im2col(x_nhwc):
    """(B,H,W,C) -> (NPOS, PATCH_PAD) row-major; feature order (kh, kw, ci);
    column ONES_COL = 1.0; columns 37..39 = 0.  No transpose."""
    xp = jnp.pad(x_nhwc, ((0, 0), (1, 1), (1, 1), (0, 0)))
    cols = [xp[:, kh:kh + H, kw:kw + W, :] for kh in range(K) for kw in range(K)]
    patches = jnp.concatenate(cols, axis=-1).reshape(NPOS, PATCH)        # (512, 36)
    ones = jnp.ones((NPOS, 1), patches.dtype)
    pad = jnp.zeros((NPOS, PATCH_PAD - PATCH - 1), patches.dtype)
    return jnp.concatenate([patches, ones, pad], axis=1)                 # (512, 40)


@jax.jit
def distiller_forward_test(image_nchw, packed_params):
    """Eval-mode Distiller.forward: returns student logits, shape (B, NUM_CLASSES)."""
    cw_packed, fc_aug, pool_t = packed_params

    # Per-call glue: only the im2col of the image (fused by XLA with the pallas_call).
    x_nhwc = jnp.transpose(image_nchw, (0, 2, 3, 1)).astype(jnp.float32)
    patches = _im2col(x_nhwc)                                            # (512, 40)

    # Single gridless pallas_call: the whole problem (<0.5 MB) is one VMEM block.
    vmem = pl.BlockSpec(memory_space=pltpu.MemorySpace.VMEM)
    out_padded = pl.pallas_call(
        _student_kernel,
        out_shape=jax.ShapeDtypeStruct((B_PAD, NC_PAD), jnp.float32),
        in_specs=[vmem, vmem, vmem, vmem],
        out_specs=vmem,
    )(patches, cw_packed, pool_t, fc_aug)

    return out_padded[:B, :NUM_CLASSES]


def _reference(image_nchw, params):
    """Pure-JAX reference of the same student, for a correctness check."""
    conv_w, conv_b, fc_w, fc_b = params
    x_nhwc = jnp.transpose(image_nchw, (0, 2, 3, 1))
    xp = jnp.pad(x_nhwc, ((0, 0), (1, 1), (1, 1), (0, 0)))
    cols = [xp[:, kh:kh + H, kw:kw + W, :] for kh in range(K) for kw in range(K)]
    patches = jnp.concatenate(cols, axis=-1).reshape(B * H * W, PATCH)
    cw_mat = jnp.transpose(conv_w, (2, 3, 1, 0)).reshape(PATCH, COUT)
    h = jnp.maximum(patches @ cw_mat + conv_b[None, :], 0.0)
    feat = jnp.mean(h.reshape(B, HW, COUT), axis=1)
    return feat @ fc_w + fc_b[None, :]


if __name__ == "__main__":
    key = jax.random.PRNGKey(0)
    k_img, k_cw, k_cb, k_fw, k_fb = jax.random.split(key, 5)

    image = jax.random.normal(k_img, (B, CIN, H, W), dtype=jnp.float32)  # NCHW, like PyTorch
    # Deterministic synthetic parameters (PyTorch conv weight layout: (Cout, Cin, kh, kw)).
    conv_w = 0.1 * jax.random.normal(k_cw, (COUT, CIN, K, K), dtype=jnp.float32)
    conv_b = 0.1 * jax.random.normal(k_cb, (COUT,), dtype=jnp.float32)
    fc_w = 0.1 * jax.random.normal(k_fw, (COUT, NUM_CLASSES), dtype=jnp.float32)
    fc_b = 0.1 * jax.random.normal(k_fb, (NUM_CLASSES,), dtype=jnp.float32)
    params = (conv_w, conv_b, fc_w, fc_b)

    # One-time parameter packing (outside the per-call jitted path).
    packed = jax.block_until_ready(pack_params(params))

    logits = jax.block_until_ready(distiller_forward_test(image, packed))
    ref = jax.block_until_ready(_reference(image, params))

    assert logits.shape == (B, NUM_CLASSES)
    assert jnp.allclose(logits, ref, atol=1e-4, rtol=1e-4)

    # TODO(synk): forward_train / train() / get_learnable_parameters are training-time
    # bookkeeping in the base Distiller with no kernel-side equivalent; only the
    # eval-mode forward (forward_test -> student logits) is implemented.
    print("KERNEL_OK")
</pallas_src>

<mosaic_0001>
module attributes {stable_mosaic.version = 11 : i64} {
  func.func @_student_kernel(%arg0: memref<512x40xf32, #tpu.memory_space<vmem>>, %arg1: memref<40x16xf32, #tpu.memory_space<vmem>>, %arg2: memref<8x512xf32, #tpu.memory_space<vmem>>, %arg3: memref<16x128xf32, #tpu.memory_space<vmem>>, %arg4: memref<8x128xf32, #tpu.memory_space<vmem>>) attributes {dimension_semantics = [], scalar_prefetch = 0 : i64, scratch_operands = 0 : i64, tpu.core_type = #tpu.core_type<tc>} {
    %c0 = arith.constant 0 : index
    %c0_0 = arith.constant 0 : index
    %0 = vector.load %arg0[%c0, %c0_0] : memref<512x40xf32, #tpu.memory_space<vmem>>, vector<512x40xf32>
    %c0_1 = arith.constant 0 : index
    %c0_2 = arith.constant 0 : index
    %1 = vector.load %arg1[%c0_1, %c0_2] : memref<40x16xf32, #tpu.memory_space<vmem>>, vector<40x16xf32>
    %cst = arith.constant dense<0.000000e+00> : vector<512x16xf32>
    %2 = tpu.matmul %0, %1, %cst {dimension_numbers = #tpu.dot_dimension_numbers<[1], [0], [0], [1], [0, 0, 1, 1], [], []>} : vector<512x40xf32>, vector<40x16xf32>, vector<512x16xf32> -> vector<512x16xf32>
    %cst_3 = arith.constant 0.000000e+00 : f32
    %3 = vector.broadcast %cst_3 : f32 to vector<512x16xf32>
    %4 = arith.maximumf %2, %3 : vector<512x16xf32>
    %c0_4 = arith.constant 0 : index
    %c0_5 = arith.constant 0 : index
    %5 = vector.load %arg2[%c0_4, %c0_5] : memref<8x512xf32, #tpu.memory_space<vmem>>, vector<8x512xf32>
    %cst_6 = arith.constant dense<0.000000e+00> : vector<8x16xf32>
    %6 = tpu.matmul %5, %4, %cst_6 {dimension_numbers = #tpu.dot_dimension_numbers<[1], [0], [0], [1], [0, 0, 1, 1], [], []>} : vector<8x512xf32>, vector<512x16xf32>, vector<8x16xf32> -> vector<8x16xf32>
    %c0_7 = arith.constant 0 : index
    %c0_8 = arith.constant 0 : index
    %7 = vector.load %arg3[%c0_7, %c0_8] : memref<16x128xf32, #tpu.memory_space<vmem>>, vector<16x128xf32>
    %cst_9 = arith.constant dense<0.000000e+00> : vector<8x128xf32>
    %8 = tpu.matmul %6, %7, %cst_9 {dimension_numbers = #tpu.dot_dimension_numbers<[1], [0], [0], [1], [0, 0, 1, 1], [], []>} : vector<8x16xf32>, vector<16x128xf32>, vector<8x128xf32> -> vector<8x128xf32>
    %c0_10 = arith.constant 0 : index
    %c0_11 = arith.constant 0 : index
    %9 = vector.load %arg4[%c0_10, %c0_11] : memref<8x128xf32, #tpu.memory_space<vmem>>, vector<8x128xf32>
    tpu.vector_store %arg4[%c0_10, %c0_11], %8 {strides = array<i32>} : memref<8x128xf32, #tpu.memory_space<vmem>>, vector<8x128xf32>,
    return
  }
}

</mosaic_0001>

<bundles_post_ra>
// kernel: distiller_forward_test.1
= control target key start
LH: loop header
LB: loop body
LE: loop exit
PB: predicated region body
PF: predicated region fallthrough
CT: control target
= control target key end

     0   :  { %vm86_vm0 = vcmask 326656   ;;  %vm1358_vm1 = vmmov 0   ;;  %vm874_vm2 = vcmask 130048   ;;  %s1734_s1 = inlined_call_operand.vmem [shape: f32[40,16], index: 1, kind: input, shape index: {}]   ;;  %s1735_s0 = inlined_call_operand.vmem [shape: f32[512,40], index: 0, kind: input, shape index: {}]   ;;  %s1736_s2 = inlined_call_operand.vmem [shape: f32[8,512], index: 2, kind: input, shape index: {}]   ;;  %s1737_s3 = inlined_call_operand.vmem [shape: f32[16,128], index: 3, kind: input, shape index: {}]   ;;  %s1738_s4 = inlined_call_operand.vmem [shape: f32[8,128], index: 4, kind: output, shape index: {}]  }
   0x1   :  { %v81_v0 = vld [vmem:[%s1734_s1] sm:$0xff]  ;;  %v82_v1 = vld [vmem:[%s1734_s1 + $0x8] sm:$0xff]  ;;  %v83_v2 = vld [vmem:[%s1734_s1 + $0x10] sm:$0xff] }
   0x2   :  { %v1273_v3 = vpack.c.bf16 %v82_v1, %v81_v0  ;;  %v84_v4 = vld [vmem:[%s1734_s1 + $0x18] sm:$0xff]  ;;  %v17_v5 = vld [vmem:[%s1735_s0] sm:$0xff]  ;;  %v18_v8 = vld [vmem:[%s1735_s0 + $0x8] sm:$0xff] }
   0x3   :  { %v1277_v6 = vpack.c.bf16 %v84_v4, %v83_v2  ;;  %1170 = vmatprep.mubr.msk.f32.mxu0 %vm86_vm0, %v17_v5  ;;  %v85_v7 = vld [vmem:[%s1734_s1 + $0x20] sm:$0xff]  ;;  %v59_v9 = vld [vmem:[%s1735_s0 + $0x150] sm:$0xff]  ;;  %v60_v11 = vld [vmem:[%s1735_s0 + $0x158] sm:$0xff] }
   0x4   :  { %1274 = vmatprep.subr.bf16.mxu0 %v1273_v3  ;;  %1348 = vmatprep.subr.bf16.mxu1 %v1273_v3  ;;  %v19_v10 = vld [vmem:[%s1735_s0 + $0x10] sm:$0xff]  ;;  %v61_v12 = vld [vmem:[%s1735_s0 + $0x160] sm:$0xff]  ;;  %v20_v13 = vld [vmem:[%s1735_s0 + $0x18] sm:$0xff] }
   0x5   :  { %1276 = vmatpush3.bf16.msra.mxu0 %v1273_v3  ;;  %1351 = vmatpush3.bf16.msra.mxu1 %v1273_v3  ;;  %v62_v14 = vld [vmem:[%s1735_s0 + $0x168] sm:$0xff]  ;;  %v21_v15 = vld [vmem:[%s1735_s0 + $0x20] sm:$0xff]  ;;  %v63_v16 = vld [vmem:[%s1735_s0 + $0x170] sm:$0xff] }
   0x6   :  { %1278 = vmatprep.subr.bf16.mxu0 %v1277_v6  ;;  %1349 = vmatprep.subr.bf16.mxu1 %v1277_v6  ;;  %v22_v17 = vld [vmem:[%s1735_s0 + $0x28] sm:$0xff]  ;;  %v64_v18 = vld [vmem:[%s1735_s0 + $0x178] sm:$0xff]  ;;  %v23_v19 = vld [vmem:[%s1735_s0 + $0x30] sm:$0xff] }
   0x7   :  { %1233 = vmatprep.mubr.msk.f32.mxu1 %vm86_vm0, %v59_v9  ;;  %v65_v20 = vld [vmem:[%s1735_s0 + $0x180] sm:$0xff]  ;;  %v24_v21 = vld [vmem:[%s1735_s0 + $0x38] sm:$0xff]  ;;  %v66_v22 = vld [vmem:[%s1735_s0 + $0x188] sm:$0xff] }
   0x8   :  { %v25_v23 = vld [vmem:[%s1735_s0 + $0x40] sm:$0xff]  ;;  %v67_v24 = vld [vmem:[%s1735_s0 + $0x190] sm:$0xff]  ;;  %v26_v25 = vld [vmem:[%s1735_s0 + $0x48] sm:$0xff] }
   0x9   :  { %1280 = vmatpush3.bf16.msra.mxu0 %v1277_v6  ;;  %1352 = vmatpush3.bf16.msra.mxu1 %v1277_v6  ;;  %v68_v26 = vld [vmem:[%s1735_s0 + $0x198] sm:$0xff]  ;;  %v27_v27 = vld [vmem:[%s1735_s0 + $0x50] sm:$0xff]  ;;  %v69_v28 = vld [vmem:[%s1735_s0 + $0x1a0] sm:$0xff] }
   0xa   :  { %1168 = vmatprep.subr.mxu0 %v85_v7  ;;  %1350 = vmatprep.subr.mxu1 %v85_v7  ;;  %v28_v29 = vld [vmem:[%s1735_s0 + $0x58] sm:$0xff]  ;;  %v70_v30 = vld [vmem:[%s1735_s0 + $0x1a8] sm:$0xff]  ;;  %v29_v31 = vld [vmem:[%s1735_s0 + $0x60] sm:$0xff] }
   0xb   :  { %v71_v32 = vld [vmem:[%s1735_s0 + $0x1b0] sm:$0xff]  ;;  %v30_v33 = vld [vmem:[%s1735_s0 + $0x68] sm:$0xff]  ;;  %v72_v34 = vld [vmem:[%s1735_s0 + $0x1b8] sm:$0xff] }
   0xc   :  { %v31_v35 = vld [vmem:[%s1735_s0 + $0x70] sm:$0xff]  ;;  %v73_v36 = vld [vmem:[%s1735_s0 + $0x1c0] sm:$0xff]  ;;  %v32_v37 = vld [vmem:[%s1735_s0 + $0x78] sm:$0xff] }
   0xd   :  { %1169 = vmatpush3.msra.mxu0 %v85_v7  ;;  %1353 = vmatpush3.msra.mxu1 %v85_v7  ;;  %v74_v38 = vld [vmem:[%s1735_s0 + $0x1c8] sm:$0xff]  ;;  %v33_v39 = vld [vmem:[%s1735_s0 + $0x80] sm:$0xff]  ;;  %v75_v40 = vld [vmem:[%s1735_s0 + $0x1d0] sm:$0xff] }
   0xe   :  { %1171 = vmatmul.mubr.msk.f32.vlgmr.msra.gmra.mrb[0].mxu0 %vm86_vm0, %v18_v8  ;;  %1234 = vmatmul.mubr.msk.f32.vlgmr.msra.gmra.mrb[0].mxu1 %vm86_vm0, %v60_v11  ;;  %v34_v41 = vld [vmem:[%s1735_s0 + $0x88] sm:$0xff]  ;;  %v76_v42 = vld [vmem:[%s1735_s0 + $0x1d8] sm:$0xff]  ;;  %v35_v43 = vld [vmem:[%s1735_s0 + $0x90] sm:$0xff] }
   0xf   :  { %1173 = vmatprep.mubr.msk.f32.mxu0 %vm86_vm0, %v19_v10  ;;  %1236 = vmatprep.mubr.msk.f32.mxu1 %vm86_vm0, %v61_v12  ;;  %v77_v44 = vld [vmem:[%s1735_s0 + $0x1e0] sm:$0xff]  ;;  %v36_v45 = vld [vmem:[%s1735_s0 + $0x98] sm:$0xff]  ;;  %v78_v46 = vld [vmem:[%s1735_s0 + $0x1e8] sm:$0xff] }
  0x10   :  { %v37_v47 = vld [vmem:[%s1735_s0 + $0xa0] sm:$0xff]  ;;  %v79_v48 = vld [vmem:[%s1735_s0 + $0x1f0] sm:$0xff]  ;;  %v38_v49 = vld [vmem:[%s1735_s0 + $0xa8] sm:$0xff] }
  0x11   :  { %v80_v50 = vld [vmem:[%s1735_s0 + $0x1f8] sm:$0xff]  ;;  %v39_v51 = vld [vmem:[%s1735_s0 + $0xb0] sm:$0xff]  ;;  %v41_v53 = vld [vmem:[%s1735_s0 + $0xc0] sm:$0xff] }
  0x12   :  { %1174 = vmatmul.mubr.msk.f32.gmra.mrb[2].mxu0 %vm86_vm0, %v20_v13  ;;  %1237 = vmatmul.mubr.msk.f32.gmra.mrb[2].mxu1 %vm86_vm0, %v62_v14  ;;  %v40_v52 = vld [vmem:[%s1735_s0 + $0xb8] sm:$0xff]  ;;  %v42_v54 = vld [vmem:[%s1735_s0 + $0xc8] sm:$0xff]  ;;  %v43_v55 = vld [vmem:[%s1735_s0 + $0xd0] sm:$0xff] }
  0x13   :  { %1176 = vmatprep.mubr.msk.f32.mxu0 %vm86_vm0, %v21_v15  ;;  %1239 = vmatprep.mubr.msk.f32.mxu1 %vm86_vm0, %v63_v16  ;;  %v44_v56 = vld [vmem:[%s1735_s0 + $0xd8] sm:$0xff]  ;;  %v45_v57 = vld [vmem:[%s1735_s0 + $0xe0] sm:$0xff]  ;;  %v46_v58 = vld [vmem:[%s1735_s0 + $0xe8] sm:$0xff] }
  0x14   :  { %v47_v59 = vld [vmem:[%s1735_s0 + $0xf0] sm:$0xff]  ;;  %v48_v60 = vld [vmem:[%s1735_s0 + $0xf8] sm:$0xff]  ;;  %v49_v61 = vld [vmem:[%s1735_s0 + $0x100] sm:$0xff] }
  0x15   :  { %v50_v62 = vld [vmem:[%s1735_s0 + $0x108] sm:$0xff]  ;;  %v51_v63 = vld [vmem:[%s1735_s0 + $0x110] sm:$0xff]  ;;  %v52_v0 = vld [vmem:[%s1735_s0 + $0x118] sm:$0xff] }
  0x16   :  { %1177 = vmatmul.mubr.msk.f32.gmra.mrb[4].mxu0 %vm86_vm0, %v22_v17  ;;  %1240 = vmatmul.mubr.msk.f32.gmra.mrb[4].mxu1 %vm86_vm0, %v64_v18  ;;  %v53_v1 = vld [vmem:[%s1735_s0 + $0x120] sm:$0xff]  ;;  %v54_v2 = vld [vmem:[%s1735_s0 + $0x128] sm:$0xff]  ;;  %v55_v3 = vld [vmem:[%s1735_s0 + $0x130] sm:$0xff] }
  0x17   :  { %1179 = vmatprep.mubr.msk.f32.mxu0 %vm86_vm0, %v23_v19  ;;  %1242 = vmatprep.mubr.msk.f32.mxu1 %vm86_vm0, %v65_v20  ;;  %v56_v4 = vld [vmem:[%s1735_s0 + $0x138] sm:$0xff]  ;;  %v57_v5 = vld [vmem:[%s1735_s0 + $0x140] sm:$0xff]  ;;  %v58_v6 = vld [vmem:[%s1735_s0 + $0x148] sm:$0xff] }
  0x18   :  { %v729_v7 = vld [vmem:[%s1736_s2 + $0x8] sm:$0xff] }
  0x1a   :  { %1180 = vmatmul.mubr.msk.f32.gmra.mrb[6].mxu0 %vm86_vm0, %v24_v21  ;;  %1243 = vmatmul.mubr.msk.f32.gmra.mrb[6].mxu1 %vm86_vm0, %v66_v22 }
  0x1b   :  { %1182 = vmatprep.mubr.msk.f32.mxu0 %vm86_vm0, %v25_v23  ;;  %1245 = vmatprep.mubr.msk.f32.mxu1 %vm86_vm0, %v67_v24 }
  0x1e   :  { %1183 = vmatmul.mubr.msk.f32.gmra.mrb[8].mxu0 %vm86_vm0, %v26_v25  ;;  %1246 = vmatmul.mubr.msk.f32.gmra.mrb[8].mxu1 %vm86_vm0, %v68_v26 }
  0x1f   :  { %1185 = vmatprep.mubr.msk.f32.mxu0 %vm86_vm0, %v27_v27  ;;  %1248 = vmatprep.mubr.msk.f32.mxu1 %vm86_vm0, %v69_v28 }
  0x22   :  { %1186 = vmatmul.mubr.msk.f32.gmra.mrb[10].mxu0 %vm86_vm0, %v28_v29  ;;  %1249 = vmatmul.mubr.msk.f32.gmra.mrb[10].mxu1 %vm86_vm0, %v70_v30 }
  0x23   :  { %1188 = vmatprep.mubr.msk.f32.mxu0 %vm86_vm0, %v29_v31  ;;  %1251 = vmatprep.mubr.msk.f32.mxu1 %vm86_vm0, %v71_v32 }
  0x26   :  { %1189 = vmatmul.mubr.msk.f32.gmra.mrb[12].mxu0 %vm86_vm0, %v30_v33  ;;  %1252 = vmatmul.mubr.msk.f32.gmra.mrb[12].mxu1 %vm86_vm0, %v72_v34 }
  0x27   :  { %1191 = vmatprep.mubr.msk.f32.mxu0 %vm86_vm0, %v31_v35  ;;  %1254 = vmatprep.mubr.msk.f32.mxu1 %vm86_vm0, %v73_v36 }
  0x2a   :  { %1192 = vmatmul.mubr.msk.f32.gmra.mrb[14].mxu0 %vm86_vm0, %v32_v37  ;;  %1255 = vmatmul.mubr.msk.f32.gmra.mrb[14].mxu1 %vm86_vm0, %v74_v38 }
  0x2b   :  { %1194 = vmatprep.mubr.msk.f32.mxu0 %vm86_vm0, %v33_v39  ;;  %1257 = vmatprep.mubr.msk.f32.mxu1 %vm86_vm0, %v75_v40 }
  0x2e   :  { %1195 = vmatmul.mubr.msk.f32.gmra.mrb[16].mxu0 %vm86_vm0, %v34_v41  ;;  %1258 = vmatmul.mubr.msk.f32.gmra.mrb[16].mxu1 %vm86_vm0, %v76_v42 }
  0x2f   :  { %1197 = vmatprep.mubr.msk.f32.mxu0 %vm86_vm0, %v35_v43  ;;  %1260 = vmatprep.mubr.msk.f32.mxu1 %vm86_vm0, %v77_v44 }
  0x32   :  { %1198 = vmatmul.mubr.msk.f32.gmra.mrb[18].mxu0 %vm86_vm0, %v36_v45  ;;  %1261 = vmatmul.mubr.msk.f32.gmra.mrb[18].mxu1 %vm86_vm0, %v78_v46 }
  0x33   :  { %1200 = vmatprep.mubr.msk.f32.mxu0 %vm86_vm0, %v37_v47  ;;  %1263 = vmatprep.mubr.msk.f32.mxu1 %vm86_vm0, %v79_v48 }
  0x36   :  { %1201 = vmatmul.mubr.msk.f32.gmra.mrb[20].mxu0 %vm86_vm0, %v38_v49  ;;  %1264 = vmatmul.mubr.msk.f32.gmra.mrb[20].mxu1 %vm86_vm0, %v80_v50 }
  0x37   :  { %1203 = vmatprep.mubr.msk.f32.mxu0 %vm86_vm0, %v39_v51  ;;  %796 = vmatprep.mubr.f32.mxu1 %v729_v7 }
  0x3a   :  { %1204 = vmatmul.mubr.msk.f32.gmra.mrb[22].mxu0 %vm86_vm0, %v40_v52 }
  0x3b   :  { %1206 = vmatprep.mubr.msk.f32.mxu0 %vm86_vm0, %v41_v53 }
  0x3e   :  { %1207 = vmatmul.mubr.msk.f32.gmra.mrb[24].mxu0 %vm86_vm0, %v42_v54 }
  0x3f   :  { %1209 = vmatprep.mubr.msk.f32.mxu0 %vm86_vm0, %v43_v55 }
  0x42   :  { %1210 = vmatmul.mubr.msk.f32.gmra.mrb[26].mxu0 %vm86_vm0, %v44_v56 }
  0x43   :  { %1212 = vmatprep.mubr.msk.f32.mxu0 %vm86_vm0, %v45_v57 }
  0x46   :  { %1213 = vmatmul.mubr.msk.f32.gmra.mrb[28].mxu0 %vm86_vm0, %v46_v58 }
  0x47   :  { %1215 = vmatprep.mubr.msk.f32.mxu0 %vm86_vm0, %v47_v59 }
  0x4a   :  { %1216 = vmatmul.mubr.msk.f32.gmra.mrb[30].mxu0 %vm86_vm0, %v48_v60 }
  0x4b   :  { %1218 = vmatprep.mubr.msk.f32.mxu0 %vm86_vm0, %v49_v61 }
  0x4e   :  { %1219 = vmatmul.mubr.msk.f32.gmra.mrb[32].mxu0 %vm86_vm0, %v50_v62 }
  0x4f   :  { %1221 = vmatprep.mubr.msk.f32.mxu0 %vm86_vm0, %v51_v63 }
  0x52   :  { %1222 = vmatmul.mubr.msk.f32.gmra.mrb[34].mxu0 %vm86_vm0, %v52_v0 }
  0x53   :  { %1224 = vmatprep.mubr.msk.f32.mxu0 %vm86_vm0, %v53_v1 }
  0x56   :  { %1225 = vmatmul.mubr.msk.f32.gmra.mrb[36].mxu0 %vm86_vm0, %v54_v2 }
  0x57   :  { %1227 = vmatprep.mubr.msk.f32.mxu0 %vm86_vm0, %v55_v3 }
  0x5a   :  { %1228 = vmatmul.mubr.msk.f32.gmra.mrb[38].mxu0 %vm86_vm0, %v56_v4 }
  0x5b   :  { %1230 = vmatprep.mubr.msk.f32.mxu0 %vm86_vm0, %v57_v5 }
  0x5e   :  { %1231 = vmatmul.mubr.msk.f32.gmra.mrb[40].mxu0 %vm86_vm0, %v58_v6 }
  0xe1   :  { %v1172_v8 = vpop.f32.mrb[0].mxu0  ;;  %v1235_v9 = vpop.f32.mrb[0].mxu1 }
  0xe2   :  { %v665_v10 = vmax.f32 %v1172_v8, 0.0  ;;  %v345_v11 = vpop.f32.mrb[1].mxu0  ;;  %v707_v12 = vmax.f32 %v1235_v9, 0.0  ;;  %v555_v13 = vpop.f32.mrb[1].mxu1 }
  0xe3   :  { %v664_v14 = vmax.f32 %v345_v11, 0.0  ;;  %v706_v15 = vmax.f32 %v555_v13, 0.0 }
  0xe5   :  { %v1659_v16 = vpack.c.bf16 %v665_v10, %v664_v14  ;;  %v1175_v17 = vpop.f32.mrb[2].mxu0  ;;  %v1661_v18 = vpack.c.bf16 %v707_v12, %v706_v15  ;;  %v1238_v19 = vpop.f32.mrb[2].mxu1 }
  0xe6   :  { %v667_v20 = vmax.f32 %v1175_v17, 0.0  ;;  %v355_v21 = vpop.f32.mrb[3].mxu0  ;;  %v709_v22 = vmax.f32 %v1238_v19, 0.0  ;;  %v565_v23 = vpop.f32.mrb[3].mxu1 }
  0xe7   :  { %v666_v24 = vmax.f32 %v355_v21, 0.0  ;;  %v708_v25 = vmax.f32 %v565_v23, 0.0 }
  0xe9   :  { %v1663_v26 = vpack.c.bf16 %v667_v20, %v666_v24  ;;  %v1178_v27 = vpop.f32.mrb[4].mxu0  ;;  %v1665_v28 = vpack.c.bf16 %v709_v22, %v708_v25  ;;  %v1241_v29 = vpop.f32.mrb[4].mxu1 }
  0xea   :  { %v669_v30 = vmax.f32 %v1178_v27, 0.0  ;;  %v365_v31 = vpop.f32.mrb[5].mxu0  ;;  %v711_v32 = vmax.f32 %v1241_v29, 0.0  ;;  %v575_v33 = vpop.f32.mrb[5].mxu1 }
  0xeb   :  { %v668_v34 = vmax.f32 %v365_v31, 0.0  ;;  %v710_v35 = vmax.f32 %v575_v33, 0.0 }
  0xed   :  { %v1667_v36 = vpack.c.bf16 %v669_v30, %v668_v34  ;;  %v1181_v37 = vpop.f32.mrb[6].mxu0  ;;  %v1669_v38 = vpack.c.bf16 %v711_v32, %v710_v35  ;;  %v1244_v39 = vpop.f32.mrb[6].mxu1 }
  0xee   :  { %v671_v40 = vmax.f32 %v1181_v37, 0.0  ;;  %v375_v41 = vpop.f32.mrb[7].mxu0  ;;  %v713_v42 = vmax.f32 %v1244_v39, 0.0  ;;  %v585_v43 = vpop.f32.mrb[7].mxu1 }
  0xef   :  { %v670_v44 = vmax.f32 %v375_v41, 0.0  ;;  %v712_v45 = vmax.f32 %v585_v43, 0.0 }
  0xf1   :  { %v1671_v46 = vpack.c.bf16 %v671_v40, %v670_v44  ;;  %v1184_v47 = vpop.f32.mrb[8].mxu0  ;;  %v1673_v48 = vpack.c.bf16 %v713_v42, %v712_v45  ;;  %v1247_v49 = vpop.f32.mrb[8].mxu1 }
  0xf2   :  { %v673_v50 = vmax.f32 %v1184_v47, 0.0  ;;  %v385_v51 = vpop.f32.mrb[9].mxu0  ;;  %v715_v52 = vmax.f32 %v1247_v49, 0.0  ;;  %v595_v53 = vpop.f32.mrb[9].mxu1 }
  0xf3   :  { %v672_v54 = vmax.f32 %v385_v51, 0.0  ;;  %v714_v55 = vmax.f32 %v595_v53, 0.0 }
  0xf5   :  { %v1675_v56 = vpack.c.bf16 %v673_v50, %v672_v54  ;;  %v1187_v57 = vpop.f32.mrb[10].mxu0  ;;  %v1677_v58 = vpack.c.bf16 %v715_v52, %v714_v55  ;;  %v1250_v59 = vpop.f32.mrb[10].mxu1 }
  0xf6   :  { %v675_v60 = vmax.f32 %v1187_v57, 0.0  ;;  %v395_v61 = vpop.f32.mrb[11].mxu0  ;;  %v717_v62 = vmax.f32 %v1250_v59, 0.0  ;;  %v605_v63 = vpop.f32.mrb[11].mxu1 }
  0xf7   :  { %v674_v0 = vmax.f32 %v395_v61, 0.0  ;;  %v716_v1 = vmax.f32 %v605_v63, 0.0 }
  0xf9   :  { %v1679_v2 = vpack.c.bf16 %v675_v60, %v674_v0  ;;  %v1190_v3 = vpop.f32.mrb[12].mxu0  ;;  %v1681_v4 = vpack.c.bf16 %v717_v62, %v716_v1  ;;  %v1253_v5 = vpop.f32.mrb[12].mxu1 }
  0xfa   :  { %v677_v6 = vmax.f32 %v1190_v3, 0.0  ;;  %v405_v7 = vpop.f32.mrb[13].mxu0  ;;  %v719_v8 = vmax.f32 %v1253_v5, 0.0  ;;  %v615_v9 = vpop.f32.mrb[13].mxu1 }
  0xfb   :  { %v676_v10 = vmax.f32 %v405_v7, 0.0  ;;  %v718_v11 = vmax.f32 %v615_v9, 0.0 }
  0xfd   :  { %v1683_v12 = vpack.c.bf16 %v677_v6, %v676_v10  ;;  %v1193_v13 = vpop.f32.mrb[14].mxu0  ;;  %v1685_v14 = vpack.c.bf16 %v719_v8, %v718_v11  ;;  %v1256_v15 = vpop.f32.mrb[14].mxu1 }
  0xfe   :  { %v679_v17 = vmax.f32 %v1193_v13, 0.0  ;;  %v415_v19 = vpop.f32.mrb[15].mxu0  ;;  %v721_v20 = vmax.f32 %v1256_v15, 0.0  ;;  %v625_v21 = vpop.f32.mrb[15].mxu1 }
  0xff   :  { %v678_v22 = vmax.f32 %v415_v19, 0.0  ;;  %v720_v23 = vmax.f32 %v625_v21, 0.0 }
 0x101   :  { %v1687_v24 = vpack.c.bf16 %v679_v17, %v678_v22  ;;  %v1196_v25 = vpop.f32.mrb[16].mxu0  ;;  %v1689_v27 = vpack.c.bf16 %v721_v20, %v720_v23  ;;  %v1259_v29 = vpop.f32.mrb[16].mxu1 }
 0x102   :  { %v681_v30 = vmax.f32 %v1196_v25, 0.0  ;;  %v425_v31 = vpop.f32.mrb[17].mxu0  ;;  %v723_v32 = vmax.f32 %v1259_v29, 0.0  ;;  %v635_v33 = vpop.f32.mrb[17].mxu1 }
 0x103   :  { %v680_v34 = vmax.f32 %v425_v31, 0.0  ;;  %v722_v35 = vmax.f32 %v635_v33, 0.0 }
 0x105   :  { %v1281_v37 = vpack.c.bf16 %v681_v30, %v680_v34  ;;  %v1199_v39 = vpop.f32.mrb[18].mxu0  ;;  %v1691_v40 = vpack.c.bf16 %v723_v32, %v722_v35  ;;  %v1262_v41 = vpop.f32.mrb[18].mxu1 }
 0x106   :  { %v683_v42 = vmax.f32 %v1199_v39, 0.0  ;;  %v435_v43 = vpop.f32.mrb[19].mxu0  ;;  %v725_v44 = vmax.f32 %v1262_v41, 0.0  ;;  %v645_v45 = vpop.f32.mrb[19].mxu1 }
 0x107   :  { %v682_v47 = vmax.f32 %v435_v43, 0.0  ;;  %1282 = vmatprep.subr.bf16.mxu1 %v1281_v37  ;;  %v724_v49 = vmax.f32 %v645_v45, 0.0 }
 0x108   :  { %1284 = vmatpush3.bf16.msra.mxu1 %v1659_v16 }
 0x109   :  { %v1285_v50 = vpack.c.bf16 %v683_v42, %v682_v47  ;;  %v1202_v51 = vpop.f32.mrb[20].mxu0  ;;  %v1694_v52 = vpack.c.bf16 %v725_v44, %v724_v49  ;;  %v1265_v53 = vpop.f32.mrb[20].mxu1 }
 0x10a   :  { %v685_v54 = vmax.f32 %v1202_v51, 0.0  ;;  %v445_v55 = vpop.f32.mrb[21].mxu0  ;;  %v727_v57 = vmax.f32 %v1265_v53, 0.0  ;;  %v655_v59 = vpop.f32.mrb[21].mxu1 }
 0x10b   :  { %v684_v60 = vmax.f32 %v445_v55, 0.0  ;;  %1286 = vmatprep.subr.bf16.mxu1 %v1285_v50  ;;  %v726_v61 = vmax.f32 %v655_v59, 0.0 }
 0x10c   :  { %1288 = vmatpush3.bf16.msra.mxu1 %v1663_v26 }
 0x10d   :  { %v1289_v62 = vpack.c.bf16 %v685_v54, %v684_v60  ;;  %v1205_v63 = vpop.f32.mrb[22].mxu0  ;;  %v1697_v0 = vpack.c.bf16 %v727_v57, %v726_v61 }
 0x10e   :  { %v687_v1 = vmax.f32 %v1205_v63, 0.0  ;;  %v455_v16 = vpop.f32.mrb[23].mxu0 }
 0x10f   :  { %v686_v3 = vmax.f32 %v455_v16, 0.0  ;;  %1290 = vmatprep.subr.bf16.mxu1 %v1289_v62 }
 0x110   :  { %1292 = vmatpush3.bf16.msra.mxu1 %v1667_v36 }
 0x111   :  { %v1293_v5 = vpack.c.bf16 %v687_v1, %v686_v3  ;;  %v1208_v6 = vpop.f32.mrb[24].mxu0 }
 0x112   :  { %v689_v7 = vmax.f32 %v1208_v6, 0.0  ;;  %v465_v8 = vpop.f32.mrb[25].mxu0 }
 0x113   :  { %v688_v9 = vmax.f32 %v465_v8, 0.0  ;;  %1294 = vmatprep.subr.bf16.mxu1 %v1293_v5 }
 0x114   :  { %1296 = vmatpush3.bf16.msra.mxu1 %v1671_v46 }
 0x115   :  { %v1297_v10 = vpack.c.bf16 %v689_v7, %v688_v9  ;;  %v1211_v26 = vpop.f32.mrb[26].mxu0 }
 0x116   :  { %v691_v11 = vmax.f32 %v1211_v26, 0.0  ;;  %v475_v13 = vpop.f32.mrb[27].mxu0 }
 0x117   :  { %v690_v15 = vmax.f32 %v475_v13, 0.0  ;;  %1298 = vmatprep.subr.bf16.mxu1 %v1297_v10 }
 0x118   :  { %1300 = vmatpush3.bf16.msra.mxu1 %v1675_v56 }
 0x119   :  { %v1301_v17 = vpack.c.bf16 %v691_v11, %v690_v15  ;;  %v1214_v19 = vpop.f32.mrb[28].mxu0 }
 0x11a   :  { %v693_v20 = vmax.f32 %v1214_v19, 0.0  ;;  %v485_v36 = vpop.f32.mrb[29].mxu0 }
 0x11b   :  { %v692_v21 = vmax.f32 %v485_v36, 0.0  ;;  %1302 = vmatprep.subr.bf16.mxu1 %v1301_v17 }
 0x11c   :  { %1304 = vmatpush3.bf16.msra.mxu1 %v1679_v2  ;;  %v728_v2 = vld [vmem:[%s1736_s2] sm:$0xff] }
 0x11d   :  { %v1305_v22 = vpack.c.bf16 %v693_v20, %v692_v21  ;;  %v1217_v23 = vpop.f32.mrb[30].mxu0 }
 0x11e   :  { %v695_v25 = vmax.f32 %v1217_v23, 0.0  ;;  %v495_v46 = vpop.f32.mrb[31].mxu0 }
 0x11f   :  { %v694_v29 = vmax.f32 %v495_v46, 0.0  ;;  %1306 = vmatprep.subr.bf16.mxu1 %v1305_v22 }
 0x120   :  { %1308 = vmatpush3.bf16.msra.mxu1 %v1683_v12  ;;  %v731_v12 = vld [vmem:[%s1736_s2 + $0x18] sm:$0xff] }
 0x121   :  { %v1309_v30 = vpack.c.bf16 %v695_v25, %v694_v29  ;;  %v1220_v31 = vpop.f32.mrb[32].mxu0 }
 0x122   :  { %v697_v32 = vmax.f32 %v1220_v31, 0.0  ;;  %v505_v56 = vpop.f32.mrb[33].mxu0 }
 0x123   :  { %v696_v33 = vmax.f32 %v505_v56, 0.0  ;;  %1310 = vmatprep.subr.bf16.mxu1 %v1309_v30 }
 0x124   :  { %1312 = vmatpush3.bf16.msra.mxu1 %v1687_v24 }
 0x125   :  { %v1315_v34 = vpack.c.bf16 %v697_v32, %v696_v33  ;;  %v1223_v35 = vpop.f32.mrb[34].mxu0  ;;  %1314 = vmatprep.subr.bf16.mxu1 %v1673_v48 }
 0x126   :  { %v699_v37 = vmax.f32 %v1223_v35, 0.0  ;;  %v515_v39 = vpop.f32.mrb[35].mxu0 }
 0x127   :  { %v698_v41 = vmax.f32 %v515_v39, 0.0  ;;  %797 = vmatmul.mubr.f32.vlgmr.msra.gmra.mrb[22].mxu1 %v728_v2 }
 0x128   :  { %1316 = vmatpush3.bf16.msra.mxu1 %v1315_v34  ;;  %866 = vmatprep.mubr.f32.mxu1 %v731_v12 }
 0x129   :  { %v1319_v42 = vpack.c.bf16 %v699_v37, %v698_v41  ;;  %v1226_v24 = vpop.f32.mrb[36].mxu0  ;;  %1318 = vmatprep.subr.bf16.mxu1 %v1677_v58 }
 0x12a   :  { %v701_v43 = vmax.f32 %v1226_v24, 0.0  ;;  %v525_v44 = vpop.f32.mrb[37].mxu0 }
 0x12b   :  { %v700_v45 = vmax.f32 %v525_v44, 0.0 }
 0x12c   :  { %1320 = vmatpush3.bf16.msra.mxu1 %v1319_v42 }
 0x12d   :  { %v1323_v47 = vpack.c.bf16 %v701_v43, %v700_v45  ;;  %v1229_v48 = vpop.f32.mrb[38].mxu0  ;;  %1322 = vmatprep.subr.bf16.mxu1 %v1681_v4  ;;  %v730_v4 = vld [vmem:[%s1736_s2 + $0x10] sm:$0xff] }
 0x12e   :  { %v703_v49 = vmax.f32 %v1229_v48, 0.0  ;;  %v535_v50 = vpop.f32.mrb[39].mxu0 }
 0x12f   :  { %v702_v51 = vmax.f32 %v535_v50, 0.0 }
 0x130   :  { %1324 = vmatpush3.bf16.msra.mxu1 %v1323_v47 }
 0x131   :  { %v1327_v53 = vpack.c.bf16 %v703_v49, %v702_v51  ;;  %v1232_v54 = vpop.f32.mrb[40].mxu0  ;;  %1326 = vmatprep.subr.bf16.mxu1 %v1685_v14  ;;  %v872_v14 = vld [vmem:[%s1737_s3] sm:$0xff] }
 0x132   :  { %v705_v55 = vmax.f32 %v1232_v54, 0.0  ;;  %v545_v57 = vpop.f32.mrb[41].mxu0 }
 0x133   :  { %v704_v59 = vmax.f32 %v545_v57, 0.0 }
 0x134   :  { %1328 = vmatpush3.bf16.msra.mxu1 %v1327_v53 }
 0x135   :  { %v1331_v58 = vpack.c.bf16 %v705_v55, %v704_v59  ;;  %1330 = vmatprep.subr.bf16.mxu1 %v1689_v27 }
 0x138   :  { %1332 = vmatpush3.bf16.msra.mxu1 %v1331_v58 }
 0x139   :  { %1334 = vmatprep.subr.bf16.mxu1 %v1691_v40  ;;  %v1357_v40 = vmov 0.0|0.0  }
 0x13c   :  { %1336 = vmatpush3.bf16.msra.mxu1 %v1661_v18  ;;  %v873_v18 = vld [vmem:[%s1737_s3 + $0x8] sm:$0xff] }
 0x13d   :  { %1338 = vmatprep.subr.bf16.mxu1 %v1694_v52  ;;  %v1346_v27 = vpack.c.bf16 %v873_v18, %v872_v14 }
 0x140   :  { %1340 = vmatpush3.bf16.msra.mxu1 %v1665_v28  ;;  %v1359_v28 = vmov 0.0  }
 0x141   :  { %1342 = vmatprep.subr.bf16.mxu1 %v1697_v0 }
 0x144   :  { %1344 = vmatpush3.bf16.msra.mxu1 %v1669_v38 }
 0x145   :  { %1345 = vmatprep.subr.bf16.mxu1 %v1357_v40 }
 0x147   :  { %867 = vmatmul.mubr.f32.vlgmr.msra.gmra.mrb[24].mxu1 %v730_v4 }
 0x148   :  { %1347 = vmatpush3.bf16.msra.mxu1 %v1346_v27  ;;  %1270 = vmatprep.mubr.msk.f32.mxu1 %vm1358_vm1, %v1359_v28 }
 0x1fa   :  { %v1119_v38 = vpop.f32.mrb[22].mxu1 }
 0x1fb   :  { %v1120_v52 = vpop.f32.mrb[23].mxu1 }
 0x1fc   :  { %v1121_v60 = vadd.f32 %v1120_v52, %v1119_v38 }
 0x21a   :  { %v1154_v61 = vpop.f32.mrb[24].mxu1 }
 0x21b   :  { %v1155_v62 = vpop.f32.mrb[25].mxu1 }
 0x21c   :  { %v1156_v63 = vadd.f32 %v1155_v62, %v1154_v61 }
 0x21e   :  { %v869_v0 = vadd.f32 %v1156_v63, %v1121_v60 }
 0x220   :  { %1271 = vmatmul.mubr.msk.f32.vlgmr.msra.gmra.mrb[26].mxu1 %vm874_vm2, %v869_v0 }
 0x2f3   :  { %v944_v1 = vpop.f32.mrb[26].mxu1 }
 0x2f4   :  { %948 = vst [vmem:[%s1738_s4] sm:$0xff] %v944_v1  ;;  %v1272_v16 = vpop.f32.mrb[27].mxu1 }

</bundles_post_ra>
